<compile_context>
chip_gen: v6e
topology: v6e:2x2x1
jax: 0.10.0
libtpu: 0.0.40
codegen_flags: <defaults>
</compile_context>

<pallas_src>
import functools

import jax
import jax.numpy as jnp
from jax import lax
from jax.experimental import pallas as pl
from jax.experimental.pallas import tpu as pltpu


def _gaussian_mse_kernel(*refs, logvar_loss: bool, block_rows: int,
                         total_rows: int):
    if logvar_loss:
        mu_ref, target_ref, logstd_ref, out_ref = refs
    else:
        mu_ref, target_ref, out_ref = refs

    diff = target_ref[...].astype(jnp.float32) - mu_ref[...].astype(jnp.float32)
    term = diff * diff
    if logvar_loss:
        logvar = 2.0 * logstd_ref[...].astype(jnp.float32)
        term = logvar + term * jnp.exp(-logvar)  # exp -> EUP (free slot)

    # Mask the rows of a partial trailing tile (only emitted when needed).
    if total_rows % block_rows != 0:
        base = pl.program_id(0) * block_rows
        row = base + lax.broadcasted_iota(jnp.int32, term.shape, 0)
        term = jnp.where(row < total_rows, term, 0.0)

    # Lane-dense per-block partial sum: fold sublane groups with VPU adds only.
    d = term.shape[1]
    partial = term.reshape(block_rows // 8, 8, d).sum(axis=0)  # (8, D)
    out_ref[...] = partial[None, :, :]


def gaussian_mse_loss(mu, target, logstd, logvar_loss=False, *,
                      vmem_input_budget_bytes=12 * 1024 * 1024):
    """Pallas implementation of GaussianMSELoss.forward. Returns a scalar f32."""
    assert mu.shape == target.shape, "mu/target shape mismatch"
    assert mu.ndim == 2, "expected 2-D (batch, features) inputs"
    B, D = mu.shape

    if logvar_loss:
        assert logstd.shape == mu.shape, "logstd shape mismatch"
        inputs = (mu, target, logstd)
    else:
        # Plain MSE never reads logstd -> do not DMA it at all.
        inputs = (mu, target)
    n_in = len(inputs)

    # Tile sizing: keep (n_in inputs x 2 double-buffers x tile) under the
    # budget, which fits every generation's default scoped-VMEM limit
    # (16 MiB on v5e, 32 MiB on v6e/v7x). block_rows is a multiple of 8.
    itemsize = jnp.dtype(mu.dtype).itemsize
    tile_budget = vmem_input_budget_bytes // (2 * n_in)
    rows = max(8, (tile_budget // max(D * itemsize, 1)) // 8 * 8)
    b_pad = ((B + 7) // 8) * 8
    block_rows = min(rows, b_pad)
    num_blocks = (B + block_rows - 1) // block_rows

    kernel = functools.partial(
        _gaussian_mse_kernel,
        logvar_loss=bool(logvar_loss),
        block_rows=block_rows,
        total_rows=B,
    )

    in_spec = pl.BlockSpec((block_rows, D), lambda i: (i, 0))
    partials = pl.pallas_call(
        kernel,
        out_shape=jax.ShapeDtypeStruct((num_blocks, 8, D), jnp.float32),
        grid=(num_blocks,),
        in_specs=[in_spec] * n_in,
        out_specs=pl.BlockSpec((1, 8, D), lambda i: (i, 0, 0)),
        compiler_params=pltpu.CompilerParams(
            dimension_semantics=("parallel",),
        ),
    )(*inputs)

    # Tiny final reduction + mean (num_blocks * 8 * D f32 values).
    return jnp.sum(partials) * (1.0 / float(B * D))


def _reference(mu, target, logstd, logvar_loss=False):
    logvar = 2.0 * logstd
    if logvar_loss:
        return jnp.mean(logvar + (target - mu) ** 2 * jnp.exp(-logvar))
    return jnp.mean((target - mu) ** 2)


if __name__ == "__main__":
    key = jax.random.PRNGKey(0)
    k_mu, k_tg, k_ls, k2_mu, k2_tg, k2_ls = jax.random.split(key, 6)

    # Small (batch, features) consistent with an MSE-style loss.
    B, D = 16, 128
    mu = jax.random.normal(k_mu, (B, D), dtype=jnp.float32)
    target = jax.random.normal(k_tg, (B, D), dtype=jnp.float32)
    logstd = 0.1 * jax.random.normal(k_ls, (B, D), dtype=jnp.float32)

    # Plain-MSE branch (logstd untouched / not DMA'd).
    loss_plain = gaussian_mse_loss(mu, target, logstd, logvar_loss=False)
    jax.block_until_ready(loss_plain)
    ref_plain = _reference(mu, target, logstd, logvar_loss=False)

    # Gaussian NLL-style branch.
    loss_lv = gaussian_mse_loss(mu, target, logstd, logvar_loss=True)
    jax.block_until_ready(loss_lv)
    ref_lv = _reference(mu, target, logstd, logvar_loss=True)

    assert jnp.allclose(loss_plain, ref_plain, rtol=1e-5, atol=1e-5), (
        loss_plain, ref_plain)
    assert jnp.allclose(loss_lv, ref_lv, rtol=1e-5, atol=1e-5), (loss_lv, ref_lv)

    # Non-divisible batch + multi-block grid (forces the masked trailing tile
    # path by shrinking the VMEM budget so block_rows == 8, num_blocks == 3).
    B2 = 20
    mu2 = jax.random.normal(k2_mu, (B2, D), dtype=jnp.float32)
    target2 = jax.random.normal(k2_tg, (B2, D), dtype=jnp.float32)
    logstd2 = 0.1 * jax.random.normal(k2_ls, (B2, D), dtype=jnp.float32)
    loss_mask = gaussian_mse_loss(mu2, target2, logstd2, logvar_loss=True,
                                  vmem_input_budget_bytes=1)
    jax.block_until_ready(loss_mask)
    ref_mask = _reference(mu2, target2, logstd2, logvar_loss=True)
    assert jnp.allclose(loss_mask, ref_mask, rtol=1e-5, atol=1e-5), (
        loss_mask, ref_mask)

    print("KERNEL_OK")
</pallas_src>

<mosaic_0001>
module attributes {stable_mosaic.version = 11 : i64} {
  func.func @_gaussian_mse_kernel(%arg0: i32, %arg1: memref<16x128xf32, #tpu.memory_space<vmem>>, %arg2: memref<16x128xf32, #tpu.memory_space<vmem>>, %arg3: memref<1x8x128xf32, #tpu.memory_space<vmem>>) attributes {dimension_semantics = [#tpu.dimension_semantics<parallel>], iteration_bounds = array<i64: 1>, scalar_prefetch = 0 : i64, scratch_operands = 0 : i64, tpu.core_type = #tpu.core_type<tc>, window_params = [{transform_indices = @transform_0, window_bounds = array<i64: 16, 128>}, {transform_indices = @transform_1, window_bounds = array<i64: 16, 128>}, {transform_indices = @transform_2, window_bounds = array<i64: 1, 8, 128>}]} {
    %c0 = arith.constant 0 : index
    %c0_0 = arith.constant 0 : index
    %0 = vector.load %arg2[%c0, %c0_0] : memref<16x128xf32, #tpu.memory_space<vmem>>, vector<16x128xf32>
    %c0_1 = arith.constant 0 : index
    %c0_2 = arith.constant 0 : index
    %1 = vector.load %arg1[%c0_1, %c0_2] : memref<16x128xf32, #tpu.memory_space<vmem>>, vector<16x128xf32>
    %2 = arith.subf %0, %1 : vector<16x128xf32>
    %3 = arith.mulf %2, %2 : vector<16x128xf32>
    %4 = vector.shape_cast %3 : vector<16x128xf32> to vector<2x8x128xf32>
    %cst = arith.constant dense<0.000000e+00> : vector<8x128xf32>
    %5 = vector.multi_reduction <add>, %4, %cst [0] : vector<2x8x128xf32> to vector<8x128xf32>
    %6 = vector.shape_cast %5 : vector<8x128xf32> to vector<1x8x128xf32>
    %c0_3 = arith.constant 0 : index
    %c0_4 = arith.constant 0 : index
    %c0_5 = arith.constant 0 : index
    %7 = vector.load %arg3[%c0_3, %c0_4, %c0_5] : memref<1x8x128xf32, #tpu.memory_space<vmem>>, vector<1x8x128xf32>
    tpu.vector_store %arg3[%c0_3, %c0_4, %c0_5], %6 {strides = array<i32>} : memref<1x8x128xf32, #tpu.memory_space<vmem>>, vector<1x8x128xf32>,
    return
  }
  func.func @transform_0(%arg0: i32) -> (i32, i32) {
    %c0_i32 = arith.constant 0 : i32
    %c0_i32_0 = arith.constant 0 : i32
    return %arg0, %c0_i32 : i32, i32
  }
  func.func @transform_1(%arg0: i32) -> (i32, i32) {
    %c0_i32 = arith.constant 0 : i32
    %c0_i32_0 = arith.constant 0 : i32
    return %arg0, %c0_i32 : i32, i32
  }
  func.func @transform_2(%arg0: i32) -> (i32, i32, i32) {
    %c0_i32 = arith.constant 0 : i32
    %c0_i32_0 = arith.constant 0 : i32
    %c0_i32_1 = arith.constant 0 : i32
    return %arg0, %c0_i32, %c0_i32_0 : i32, i32, i32
  }
}

</mosaic_0001>

<bundles_post_ra>
// kernel: tpu_custom_call.1
= control target key start
LH: loop header
LB: loop body
LE: loop exit
PB: predicated region body
PF: predicated region fallthrough
CT: control target
= control target key end

     0   :  { %7 = vsyncpa [#allocation3], 0  ;;  %s166_s0 = inlined_call_operand.hbm [shape: f32[16,128], index: 0, kind: input, shape index: {}]   ;;  %s167_s1 = inlined_call_operand.hbm [shape: f32[16,128], index: 1, kind: input, shape index: {}]   ;;  %s168_s2 = inlined_call_operand.hbm [shape: f32[1,8,128], index: 2, kind: output, shape index: {}]  }
   0x1   :  { %8 = vsyncpa [#allocation6], 0 }
   0x2   :  { %9 = vsyncpa [#allocation4], 0  ;;  %s137_s9 = smov [#allocation2]  }
   0x3   :  { %s15_s10 = sshll.u32 %s137_s9, 4  ;;  %s16_s10 = int_to_ptr.vmem [resolvable:$true] %s15_s10 }
   0x4   :  { %s79_s11 = scalar_lea.vmem %s16_s10, 256  ;;  %p84_p1 = scmp.lt.s32.totalorder %s16_s10, %s16_s10 }
   0x5   :  { %p80_p0 = scmp.ne.s32.totalorder %s16_s10, %s79_s11  ;;  %p85_p2 = scmp.lt.s32.totalorder %s79_s11, %s79_s11 }
   0x7   :  { %p86_p3 = por %p85_p2, %p84_p1 }
   0x9   :  { %p87_p4 = pnand %p86_p3, %p80_p0 }
   0xb   :  { %90 = shalt.err (!%p87_p4)
}
   0xc   :  { %s138_s12 = smov 128   ;;  %s139_s13 = smov 8  }
   0xd   :  { %21 = dma.hbm_to_vmem [thread:$0]  %s166_s0, 256, %s16_s10, [#allocation3], %s138_s12, %s138_s12, %s139_s13  }
   0xe   :  { %s140_s16 = smov [#allocation5]  }
   0xf   :  { %s27_s17 = sshll.u32 %s140_s16, 4  ;;  %s28_s17 = int_to_ptr.vmem [resolvable:$true] %s27_s17 }
  0x10   :  { %s99_s18 = scalar_lea.vmem %s28_s17, 256  ;;  %p104_p6 = scmp.lt.s32.totalorder %s28_s17, %s28_s17 }
  0x11   :  { %p100_p5 = scmp.ne.s32.totalorder %s28_s17, %s99_s18  ;;  %p105_p7 = scmp.lt.s32.totalorder %s99_s18, %s99_s18 }
  0x13   :  { %p106_p8 = por %p105_p7, %p104_p6 }
  0x15   :  { %p107_p9 = pnand %p106_p8, %p100_p5 }
  0x17   :  { %110 = shalt.err (!%p107_p9)
}
  0x18   :  { %33 = dma.hbm_to_vmem [thread:$0]  %s167_s1, 256, %s28_s17, [#allocation6], %s138_s12, %s138_s12, %s139_s13  }
  0x19   :  { %131 = dma.done.wait [#allocation3], 256  }
  0x1a   :  { %132 = vsyncadd [#allocation3], 4294967040 }
  0x1b   :  { %133 = dma.done.wait [#allocation6], 256  }
  0x1c   :  { %134 = vsyncadd [#allocation6], 4294967040  ;;  %v40_v0 = vld [vmem:[#allocation5] sm:$0xff]  ;;  %v41_v1 = vld [vmem:[#allocation5 + $0x8] sm:$0xff]  ;;  %s141_s0 = smov [#allocation7]  }
  0x1d   :  { %v42_v2 = vld [vmem:[#allocation2] sm:$0xff]  ;;  %v43_v3 = vld [vmem:[#allocation2 + $0x8] sm:$0xff]  ;;  %s56_s21 = sshll.u32 %s141_s0, 4  ;;  %s57_s21 = int_to_ptr.vmem [resolvable:$true] %s56_s21 }
  0x1e   :  { %v44_v4 = vsub.f32 %v40_v0, %v42_v2  ;;  %v45_v5 = vsub.f32 %v41_v1, %v43_v3  ;;  %s111_s22 = scalar_lea.vmem %s57_s21, 128  ;;  %p116_p11 = scmp.lt.s32.totalorder %s57_s21, %s57_s21 }
  0x1f   :  { %p112_p10 = scmp.ne.s32.totalorder %s57_s21, %s111_s22  ;;  %p117_p12 = scmp.lt.s32.totalorder %s111_s22, %s111_s22 }
  0x20   :  { %v46_v6 = vmul.f32 %v44_v4, %v44_v4  ;;  %v47_v7 = vmul.f32 %v45_v5, %v45_v5 }
  0x21   :  { %p118_p13 = por %p117_p12, %p116_p11 }
  0x22   :  { %v48_v8 = vadd.f32 %v47_v7, %v46_v6 }
  0x23   :  { %p119_p0 = pnand %p118_p13, %p112_p10 }
  0x24   :  { %49 = vst [vmem:[#allocation7] sm:$0xff] %v48_v8 }
  0x25   :  { %122 = shalt.err (!%p119_p0)
}
  0x26   :  { %59 = dma.vmem_to_hbm [thread:$0]  %s57_s21, 128, %s168_s2, [#allocation4]  }
  0x27   :  { %135 = dma.done.wait [#allocation4], 128  }
  0x28   :  { %136 = vsyncadd [#allocation4], 4294967168 }
  0x29   :  { %63 = vsyncpa [#allocation3], 1 }
  0x2a   :  { %64 = vsyncpa [#allocation6], 1 }
  0x2b   :  { %65 = vsyncpa [#allocation4], 1 }

</bundles_post_ra>
